<compile_context>
chip_gen: v7x
topology: tpu7x:2x2x1
jax: 0.10.0
libtpu: 0.0.40
codegen_flags: <defaults>
</compile_context>

<pallas_src>
import functools
import math

import jax
import jax.numpy as jnp
import numpy as np
from jax.experimental import pallas as pl
from jax.experimental.pallas import tpu as pltpu

NUM_LAYERS = 8
EPS = 1e-8
LANE = 128


def _round_up(x, m):
    return ((x + m - 1) // m) * m


def mapping_kernel(x_ref, w_ref, b_ref, o_ref, *, z_dim):
    """x_ref: (Bblk, K) f32; w_ref: (L, K, D) bf16 (eq-lr scale folded in);
    b_ref: (L, 1, D) f32; o_ref: (Bblk, D) f32.

    All feature-padding lanes / weight-padding rows & cols / bias-padding lanes
    are zero, so PixelNorm's sum over K lanes equals the sum over the real
    z_dim features and padded lanes stay zero through every layer.
    """
    L, K, D = w_ref.shape
    bblk = x_ref.shape[0]
    half = bblk // 2
    Kc = min(K, D)  # contraction width for layers >= 1 (real in_f = w_dim <= Kc)

    x = x_ref[...].astype(jnp.float32)

    # --- PixelNorm over the real feature dim ---
    sum_sq = jnp.sum(x * x, axis=1, keepdims=True)
    h = x * jax.lax.rsqrt(sum_sq * (1.0 / z_dim) + EPS)

    # --- 8 x WSLinear (+ ReLU except after the last) ---
    # Two independent batch halves advanced layer-by-layer: their MXU work
    # interleaves and hides result-FIFO drain between the serially dependent
    # matmuls (v5e/v6e).  sqrt(2/in_features) is folded into w_ref at prep time.
    hs = [h[:half], h[half:]]
    for i in range(NUM_LAYERS):                      # static unroll
        w = w_ref[i]                                 # (K, D) bf16
        if i > 0 and Kc < K:
            w = w[:Kc, :]                            # drop zero padding rows
        b = b_ref[i]                                 # (1, D) f32
        nxt = []
        for hh in hs:
            a = hh if (i == 0 or hh.shape[1] == Kc) else hh[:, :Kc]
            y = jnp.dot(a.astype(jnp.bfloat16), w,
                        preferred_element_type=jnp.float32) + b
            if i < NUM_LAYERS - 1:
                y = jnp.maximum(y, 0.0)
            nxt.append(y)
        hs = nxt

    o_ref[:half, :] = hs[0].astype(o_ref.dtype)
    o_ref[half:, :] = hs[1].astype(o_ref.dtype)


def pack_params(weights_t, biases):
    """Pack per-layer params into MXU-friendly arrays, eq-lr scale folded in.

    weights_t[i]: (in_i, out_i)  -- PyTorch nn.Linear weight (out,in) pre-transposed
    biases[i]   : (out_i,) or (1, out_i)
    Returns:
      w_all: (L, K, D) bf16, K = 16-padded max in-dim (bf16 sublane packing),
             D = 128-padded out-dim (lane-dense stores).
      b_all: (L, 1, D) f32.
    """
    in_dims = [int(w.shape[0]) for w in weights_t]
    out_dims = [int(w.shape[1]) for w in weights_t]
    K = _round_up(max(in_dims), 16)
    D = _round_up(max(out_dims), LANE)
    w_all = np.zeros((NUM_LAYERS, K, D), np.float32)
    b_all = np.zeros((NUM_LAYERS, 1, D), np.float32)
    for i, (w, b) in enumerate(zip(weights_t, biases)):
        in_f, out_f = w.shape
        scale = math.sqrt(2.0 / in_f)                      # WSLinear equalized-lr
        w_all[i, :in_f, :out_f] = np.asarray(w, np.float32) * scale
        b_all[i, 0, :out_f] = np.asarray(b, np.float32).reshape(-1)
    return jnp.asarray(w_all, jnp.bfloat16), jnp.asarray(b_all, jnp.float32)


def _batch_dim_semantics(num_steps):
    # v7x has 2 TensorCores per chip; only CORE_PARALLEL actually splits the
    # grid across them ("parallel" vs "arbitrary" has near-zero codegen impact).
    # Single-core chips (v5e/v6e) keep "parallel".
    try:
        kind = jax.devices()[0].device_kind.lower()
    except Exception:
        kind = ""
    if num_steps >= 2 and "v7" in kind:
        return (pltpu.CORE_PARALLEL,)
    return ("parallel",)


def mapping_network_pallas(x, w_all, b_all, *, z_dim, w_dim):
    """x: (B, z_dim) f32; w_all: (8, K, D) bf16; b_all: (8, 1, D) f32.
    Returns (B, w_dim) f32."""
    B = x.shape[0]
    L, K, D = w_all.shape

    # Batch block: multiple of 16 (bf16 sublane packing), grows with B to
    # amortize per-grid-step overhead; VMEM per step stays far under limits.
    batch_block = _round_up(min(B, 1024), 16)
    B_pad = _round_up(B, batch_block)

    # Lane/sublane zero-padded input slab (layout plumbing, not compute).
    x_p = jnp.zeros((B_pad, K), jnp.float32).at[:B, :z_dim].set(
        x.astype(jnp.float32))

    grid = (B_pad // batch_block,)
    kernel = functools.partial(mapping_kernel, z_dim=z_dim)

    # Advisory scheduling hint with REAL (unpadded) work.
    real_flops = 2 * B * (z_dim * w_dim + (NUM_LAYERS - 1) * w_dim * w_dim)
    real_bytes = (4 * B * (z_dim + w_dim)
                  + 2 * (z_dim * w_dim + (NUM_LAYERS - 1) * w_dim * w_dim)
                  + 4 * NUM_LAYERS * w_dim)

    out = pl.pallas_call(
        kernel,
        out_shape=jax.ShapeDtypeStruct((B_pad, D), jnp.float32),
        grid=grid,
        in_specs=[
            pl.BlockSpec((batch_block, K), lambda i: (i, 0)),
            # Constant index_map -> weights/biases stay VMEM-resident across steps.
            # TODO(synk): at real StyleGAN widths (D>=512) add
            # pipeline_mode=pl.Buffered(1) (or a one-shot make_async_copy) plus an
            # explicit vmem_limit_bytes so constant blocks are not double-buffered.
            pl.BlockSpec((NUM_LAYERS, K, D), lambda i: (0, 0, 0)),
            pl.BlockSpec((NUM_LAYERS, 1, D), lambda i: (0, 0, 0)),
        ],
        out_specs=pl.BlockSpec((batch_block, D), lambda i: (i, 0)),
        compiler_params=pltpu.CompilerParams(
            dimension_semantics=_batch_dim_semantics(grid[0]),
        ),
        cost_estimate=pl.CostEstimate(
            flops=real_flops, transcendentals=B, bytes_accessed=real_bytes),
    )(x_p, w_all, b_all)

    return out[:B, :w_dim]


def mapping_network_ref(x, weights_t, biases):
    """Pure-JAX f32 reference mirroring the PyTorch module (unpacked params)."""
    h = x / jnp.sqrt(jnp.mean(x**2, axis=1, keepdims=True) + EPS)
    for i, (w, b) in enumerate(zip(weights_t, biases)):
        scale = math.sqrt(2.0 / w.shape[0])
        h = (h * scale) @ w + b.reshape(1, -1)
        if i < NUM_LAYERS - 1:
            h = jnp.maximum(h, 0.0)
    return h


if __name__ == "__main__":
    # Small shapes consistent with the module: MappingNetwork(z_dim=32, w_dim=32), batch=8.
    batch, z_dim, w_dim = 8, 32, 32

    key = jax.random.PRNGKey(0)
    key, kx = jax.random.split(key)
    x = jax.random.normal(kx, (batch, z_dim), dtype=jnp.float32)

    # Deterministic parameter init matching WSLinear.__init__:
    #   weight ~ N(0, 1), bias = 0.  Weights stored pre-transposed as (in, out).
    in_dims = [z_dim] + [w_dim] * (NUM_LAYERS - 1)
    out_dims = [w_dim] * NUM_LAYERS
    weights_t, biases = [], []
    for i in range(NUM_LAYERS):
        key, kw = jax.random.split(key)
        w = jax.random.normal(kw, (in_dims[i], out_dims[i]), dtype=jnp.float32)
        b = jnp.zeros((out_dims[i],), dtype=jnp.float32)
        weights_t.append(w)
        biases.append(b)

    # One-time parameter prep: pack + fold eq-lr scale + bf16 cast + padding.
    w_all, b_all = pack_params(weights_t, biases)

    out = mapping_network_pallas(x, w_all, b_all, z_dim=z_dim, w_dim=w_dim)
    out = jax.block_until_ready(out)

    ref = jax.block_until_ready(mapping_network_ref(x, weights_t, biases))
    # bf16 MXU inputs vs f32 reference -> loosened tolerance.
    np.testing.assert_allclose(np.asarray(out), np.asarray(ref), rtol=5e-2, atol=5e-2)

    print("KERNEL_OK")
</pallas_src>

<mosaic_0001>
module attributes {stable_mosaic.version = 11 : i64} {
  func.func @mapping_kernel(%arg0: i32, %arg1: memref<16x32xf32, #tpu.memory_space<vmem>>, %arg2: memref<8x32x128xbf16, #tpu.memory_space<vmem>>, %arg3: memref<8x1x128xf32, #tpu.memory_space<vmem>>, %arg4: memref<16x128xf32, #tpu.memory_space<vmem>>) attributes {dimension_semantics = [#tpu.dimension_semantics<parallel>], iteration_bounds = array<i64: 1>, scalar_prefetch = 0 : i64, scratch_operands = 0 : i64, tpu.core_type = #tpu.core_type<tc>, window_params = [{transform_indices = @transform_0, window_bounds = array<i64: 16, 32>}, {pipeline_mode = #tpu.pipeline_mode<synchronous>, transform_indices = @transform_1, window_bounds = array<i64: 8, 32, 128>}, {pipeline_mode = #tpu.pipeline_mode<synchronous>, transform_indices = @transform_2, window_bounds = array<i64: 8, 1, 128>}, {transform_indices = @transform_3, window_bounds = array<i64: 16, 128>}]} {
    %c0 = arith.constant 0 : index
    %c0_0 = arith.constant 0 : index
    %0 = vector.load %arg1[%c0, %c0_0] : memref<16x32xf32, #tpu.memory_space<vmem>>, vector<16x32xf32>
    %1 = arith.mulf %0, %0 : vector<16x32xf32>
    %cst = arith.constant dense<0.000000e+00> : vector<16xf32>
    %2 = vector.multi_reduction <add>, %1, %cst [1] : vector<16x32xf32> to vector<16xf32>
    %3 = vector.shape_cast %2 : vector<16xf32> to vector<16x1xf32>
    %cst_1 = arith.constant 3.125000e-02 : f32
    %4 = vector.broadcast %cst_1 : f32 to vector<16x1xf32>
    %5 = arith.mulf %3, %4 : vector<16x1xf32>
    %cst_2 = arith.constant 9.99999993E-9 : f32
    %6 = vector.broadcast %cst_2 : f32 to vector<16x1xf32>
    %7 = arith.addf %5, %6 : vector<16x1xf32>
    %8 = math.rsqrt %7 : vector<16x1xf32>
    %9 = vector.broadcast %8 : vector<16x1xf32> to vector<16x32xf32>
    %10 = arith.mulf %0, %9 : vector<16x32xf32>
    %11 = vector.extract_strided_slice %10 {offsets = [0, 0], sizes = [8, 32], strides = [1, 1]} : vector<16x32xf32> to vector<8x32xf32>
    %12 = vector.extract_strided_slice %10 {offsets = [8, 0], sizes = [8, 32], strides = [1, 1]} : vector<16x32xf32> to vector<8x32xf32>
    %c0_3 = arith.constant 0 : index
    %c0_4 = arith.constant 0 : index
    %c0_5 = arith.constant 0 : index
    %13 = vector.load %arg2[%c0_3, %c0_4, %c0_5] : memref<8x32x128xbf16, #tpu.memory_space<vmem>>, vector<1x32x128xbf16>
    %14 = vector.shape_cast %13 : vector<1x32x128xbf16> to vector<32x128xbf16>
    %c0_6 = arith.constant 0 : index
    %c0_7 = arith.constant 0 : index
    %c0_8 = arith.constant 0 : index
    %15 = vector.load %arg3[%c0_6, %c0_7, %c0_8] : memref<8x1x128xf32, #tpu.memory_space<vmem>>, vector<1x1x128xf32>
    %16 = vector.shape_cast %15 : vector<1x1x128xf32> to vector<1x128xf32>
    %17 = arith.truncf %11 : vector<8x32xf32> to vector<8x32xbf16>
    %cst_9 = arith.constant dense<0.000000e+00> : vector<8x128xf32>
    %18 = tpu.matmul %17, %14, %cst_9 {dimension_numbers = #tpu.dot_dimension_numbers<[1], [0], [0], [1], [0, 0, 1, 1], [], []>} : vector<8x32xbf16>, vector<32x128xbf16>, vector<8x128xf32> -> vector<8x128xf32>
    %19 = vector.broadcast %16 : vector<1x128xf32> to vector<8x128xf32>
    %20 = arith.addf %18, %19 : vector<8x128xf32>
    %cst_10 = arith.constant 0.000000e+00 : f32
    %21 = vector.broadcast %cst_10 : f32 to vector<8x128xf32>
    %22 = arith.maximumf %20, %21 : vector<8x128xf32>
    %23 = arith.truncf %12 : vector<8x32xf32> to vector<8x32xbf16>
    %cst_11 = arith.constant dense<0.000000e+00> : vector<8x128xf32>
    %24 = tpu.matmul %23, %14, %cst_11 {dimension_numbers = #tpu.dot_dimension_numbers<[1], [0], [0], [1], [0, 0, 1, 1], [], []>} : vector<8x32xbf16>, vector<32x128xbf16>, vector<8x128xf32> -> vector<8x128xf32>
    %25 = vector.broadcast %16 : vector<1x128xf32> to vector<8x128xf32>
    %26 = arith.addf %24, %25 : vector<8x128xf32>
    %cst_12 = arith.constant 0.000000e+00 : f32
    %27 = vector.broadcast %cst_12 : f32 to vector<8x128xf32>
    %28 = arith.maximumf %26, %27 : vector<8x128xf32>
    %c1 = arith.constant 1 : index
    %c0_13 = arith.constant 0 : index
    %c0_14 = arith.constant 0 : index
    %29 = vector.load %arg2[%c1, %c0_13, %c0_14] : memref<8x32x128xbf16, #tpu.memory_space<vmem>>, vector<1x32x128xbf16>
    %30 = vector.shape_cast %29 : vector<1x32x128xbf16> to vector<32x128xbf16>
    %c1_15 = arith.constant 1 : index
    %c0_16 = arith.constant 0 : index
    %c0_17 = arith.constant 0 : index
    %31 = vector.load %arg3[%c1_15, %c0_16, %c0_17] : memref<8x1x128xf32, #tpu.memory_space<vmem>>, vector<1x1x128xf32>
    %32 = vector.shape_cast %31 : vector<1x1x128xf32> to vector<1x128xf32>
    %33 = vector.extract_strided_slice %22 {offsets = [0, 0], sizes = [8, 32], strides = [1, 1]} : vector<8x128xf32> to vector<8x32xf32>
    %34 = arith.truncf %33 : vector<8x32xf32> to vector<8x32xbf16>
    %cst_18 = arith.constant dense<0.000000e+00> : vector<8x128xf32>
    %35 = tpu.matmul %34, %30, %cst_18 {dimension_numbers = #tpu.dot_dimension_numbers<[1], [0], [0], [1], [0, 0, 1, 1], [], []>} : vector<8x32xbf16>, vector<32x128xbf16>, vector<8x128xf32> -> vector<8x128xf32>
    %36 = vector.broadcast %32 : vector<1x128xf32> to vector<8x128xf32>
    %37 = arith.addf %35, %36 : vector<8x128xf32>
    %cst_19 = arith.constant 0.000000e+00 : f32
    %38 = vector.broadcast %cst_19 : f32 to vector<8x128xf32>
    %39 = arith.maximumf %37, %38 : vector<8x128xf32>
    %40 = vector.extract_strided_slice %28 {offsets = [0, 0], sizes = [8, 32], strides = [1, 1]} : vector<8x128xf32> to vector<8x32xf32>
    %41 = arith.truncf %40 : vector<8x32xf32> to vector<8x32xbf16>
    %cst_20 = arith.constant dense<0.000000e+00> : vector<8x128xf32>
    %42 = tpu.matmul %41, %30, %cst_20 {dimension_numbers = #tpu.dot_dimension_numbers<[1], [0], [0], [1], [0, 0, 1, 1], [], []>} : vector<8x32xbf16>, vector<32x128xbf16>, vector<8x128xf32> -> vector<8x128xf32>
    %43 = vector.broadcast %32 : vector<1x128xf32> to vector<8x128xf32>
    %44 = arith.addf %42, %43 : vector<8x128xf32>
    %cst_21 = arith.constant 0.000000e+00 : f32
    %45 = vector.broadcast %cst_21 : f32 to vector<8x128xf32>
    %46 = arith.maximumf %44, %45 : vector<8x128xf32>
    %c2 = arith.constant 2 : index
    %c0_22 = arith.constant 0 : index
    %c0_23 = arith.constant 0 : index
    %47 = vector.load %arg2[%c2, %c0_22, %c0_23] : memref<8x32x128xbf16, #tpu.memory_space<vmem>>, vector<1x32x128xbf16>
    %48 = vector.shape_cast %47 : vector<1x32x128xbf16> to vector<32x128xbf16>
    %c2_24 = arith.constant 2 : index
    %c0_25 = arith.constant 0 : index
    %c0_26 = arith.constant 0 : index
    %49 = vector.load %arg3[%c2_24, %c0_25, %c0_26] : memref<8x1x128xf32, #tpu.memory_space<vmem>>, vector<1x1x128xf32>
    %50 = vector.shape_cast %49 : vector<1x1x128xf32> to vector<1x128xf32>
    %51 = vector.extract_strided_slice %39 {offsets = [0, 0], sizes = [8, 32], strides = [1, 1]} : vector<8x128xf32> to vector<8x32xf32>
    %52 = arith.truncf %51 : vector<8x32xf32> to vector<8x32xbf16>
    %cst_27 = arith.constant dense<0.000000e+00> : vector<8x128xf32>
    %53 = tpu.matmul %52, %48, %cst_27 {dimension_numbers = #tpu.dot_dimension_numbers<[1], [0], [0], [1], [0, 0, 1, 1], [], []>} : vector<8x32xbf16>, vector<32x128xbf16>, vector<8x128xf32> -> vector<8x128xf32>
    %54 = vector.broadcast %50 : vector<1x128xf32> to vector<8x128xf32>
    %55 = arith.addf %53, %54 : vector<8x128xf32>
    %cst_28 = arith.constant 0.000000e+00 : f32
    %56 = vector.broadcast %cst_28 : f32 to vector<8x128xf32>
    %57 = arith.maximumf %55, %56 : vector<8x128xf32>
    %58 = vector.extract_strided_slice %46 {offsets = [0, 0], sizes = [8, 32], strides = [1, 1]} : vector<8x128xf32> to vector<8x32xf32>
    %59 = arith.truncf %58 : vector<8x32xf32> to vector<8x32xbf16>
    %cst_29 = arith.constant dense<0.000000e+00> : vector<8x128xf32>
    %60 = tpu.matmul %59, %48, %cst_29 {dimension_numbers = #tpu.dot_dimension_numbers<[1], [0], [0], [1], [0, 0, 1, 1], [], []>} : vector<8x32xbf16>, vector<32x128xbf16>, vector<8x128xf32> -> vector<8x128xf32>
    %61 = vector.broadcast %50 : vector<1x128xf32> to vector<8x128xf32>
    %62 = arith.addf %60, %61 : vector<8x128xf32>
    %cst_30 = arith.constant 0.000000e+00 : f32
    %63 = vector.broadcast %cst_30 : f32 to vector<8x128xf32>
    %64 = arith.maximumf %62, %63 : vector<8x128xf32>
    %c3 = arith.constant 3 : index
    %c0_31 = arith.constant 0 : index
    %c0_32 = arith.constant 0 : index
    %65 = vector.load %arg2[%c3, %c0_31, %c0_32] : memref<8x32x128xbf16, #tpu.memory_space<vmem>>, vector<1x32x128xbf16>
    %66 = vector.shape_cast %65 : vector<1x32x128xbf16> to vector<32x128xbf16>
    %c3_33 = arith.constant 3 : index
    %c0_34 = arith.constant 0 : index
    %c0_35 = arith.constant 0 : index
    %67 = vector.load %arg3[%c3_33, %c0_34, %c0_35] : memref<8x1x128xf32, #tpu.memory_space<vmem>>, vector<1x1x128xf32>
    %68 = vector.shape_cast %67 : vector<1x1x128xf32> to vector<1x128xf32>
    %69 = vector.extract_strided_slice %57 {offsets = [0, 0], sizes = [8, 32], strides = [1, 1]} : vector<8x128xf32> to vector<8x32xf32>
    %70 = arith.truncf %69 : vector<8x32xf32> to vector<8x32xbf16>
    %cst_36 = arith.constant dense<0.000000e+00> : vector<8x128xf32>
    %71 = tpu.matmul %70, %66, %cst_36 {dimension_numbers = #tpu.dot_dimension_numbers<[1], [0], [0], [1], [0, 0, 1, 1], [], []>} : vector<8x32xbf16>, vector<32x128xbf16>, vector<8x128xf32> -> vector<8x128xf32>
    %72 = vector.broadcast %68 : vector<1x128xf32> to vector<8x128xf32>
    %73 = arith.addf %71, %72 : vector<8x128xf32>
    %cst_37 = arith.constant 0.000000e+00 : f32
    %74 = vector.broadcast %cst_37 : f32 to vector<8x128xf32>
    %75 = arith.maximumf %73, %74 : vector<8x128xf32>
    %76 = vector.extract_strided_slice %64 {offsets = [0, 0], sizes = [8, 32], strides = [1, 1]} : vector<8x128xf32> to vector<8x32xf32>
    %77 = arith.truncf %76 : vector<8x32xf32> to vector<8x32xbf16>
    %cst_38 = arith.constant dense<0.000000e+00> : vector<8x128xf32>
    %78 = tpu.matmul %77, %66, %cst_38 {dimension_numbers = #tpu.dot_dimension_numbers<[1], [0], [0], [1], [0, 0, 1, 1], [], []>} : vector<8x32xbf16>, vector<32x128xbf16>, vector<8x128xf32> -> vector<8x128xf32>
    %79 = vector.broadcast %68 : vector<1x128xf32> to vector<8x128xf32>
    %80 = arith.addf %78, %79 : vector<8x128xf32>
    %cst_39 = arith.constant 0.000000e+00 : f32
    %81 = vector.broadcast %cst_39 : f32 to vector<8x128xf32>
    %82 = arith.maximumf %80, %81 : vector<8x128xf32>
    %c4 = arith.constant 4 : index
    %c0_40 = arith.constant 0 : index
    %c0_41 = arith.constant 0 : index
    %83 = vector.load %arg2[%c4, %c0_40, %c0_41] : memref<8x32x128xbf16, #tpu.memory_space<vmem>>, vector<1x32x128xbf16>
    %84 = vector.shape_cast %83 : vector<1x32x128xbf16> to vector<32x128xbf16>
    %c4_42 = arith.constant 4 : index
    %c0_43 = arith.constant 0 : index
    %c0_44 = arith.constant 0 : index
    %85 = vector.load %arg3[%c4_42, %c0_43, %c0_44] : memref<8x1x128xf32, #tpu.memory_space<vmem>>, vector<1x1x128xf32>
    %86 = vector.shape_cast %85 : vector<1x1x128xf32> to vector<1x128xf32>
    %87 = vector.extract_strided_slice %75 {offsets = [0, 0], sizes = [8, 32], strides = [1, 1]} : vector<8x128xf32> to vector<8x32xf32>
    %88 = arith.truncf %87 : vector<8x32xf32> to vector<8x32xbf16>
    %cst_45 = arith.constant dense<0.000000e+00> : vector<8x128xf32>
    %89 = tpu.matmul %88, %84, %cst_45 {dimension_numbers = #tpu.dot_dimension_numbers<[1], [0], [0], [1], [0, 0, 1, 1], [], []>} : vector<8x32xbf16>, vector<32x128xbf16>, vector<8x128xf32> -> vector<8x128xf32>
    %90 = vector.broadcast %86 : vector<1x128xf32> to vector<8x128xf32>
    %91 = arith.addf %89, %90 : vector<8x128xf32>
    %cst_46 = arith.constant 0.000000e+00 : f32
    %92 = vector.broadcast %cst_46 : f32 to vector<8x128xf32>
    %93 = arith.maximumf %91, %92 : vector<8x128xf32>
    %94 = vector.extract_strided_slice %82 {offsets = [0, 0], sizes = [8, 32], strides = [1, 1]} : vector<8x128xf32> to vector<8x32xf32>
    %95 = arith.truncf %94 : vector<8x32xf32> to vector<8x32xbf16>
    %cst_47 = arith.constant dense<0.000000e+00> : vector<8x128xf32>
    %96 = tpu.matmul %95, %84, %cst_47 {dimension_numbers = #tpu.dot_dimension_numbers<[1], [0], [0], [1], [0, 0, 1, 1], [], []>} : vector<8x32xbf16>, vector<32x128xbf16>, vector<8x128xf32> -> vector<8x128xf32>
    %97 = vector.broadcast %86 : vector<1x128xf32> to vector<8x128xf32>
    %98 = arith.addf %96, %97 : vector<8x128xf32>
    %cst_48 = arith.constant 0.000000e+00 : f32
    %99 = vector.broadcast %cst_48 : f32 to vector<8x128xf32>
    %100 = arith.maximumf %98, %99 : vector<8x128xf32>
    %c5 = arith.constant 5 : index
    %c0_49 = arith.constant 0 : index
    %c0_50 = arith.constant 0 : index
    %101 = vector.load %arg2[%c5, %c0_49, %c0_50] : memref<8x32x128xbf16, #tpu.memory_space<vmem>>, vector<1x32x128xbf16>
    %102 = vector.shape_cast %101 : vector<1x32x128xbf16> to vector<32x128xbf16>
    %c5_51 = arith.constant 5 : index
    %c0_52 = arith.constant 0 : index
    %c0_53 = arith.constant 0 : index
    %103 = vector.load %arg3[%c5_51, %c0_52, %c0_53] : memref<8x1x128xf32, #tpu.memory_space<vmem>>, vector<1x1x128xf32>
    %104 = vector.shape_cast %103 : vector<1x1x128xf32> to vector<1x128xf32>
    %105 = vector.extract_strided_slice %93 {offsets = [0, 0], sizes = [8, 32], strides = [1, 1]} : vector<8x128xf32> to vector<8x32xf32>
    %106 = arith.truncf %105 : vector<8x32xf32> to vector<8x32xbf16>
    %cst_54 = arith.constant dense<0.000000e+00> : vector<8x128xf32>
    %107 = tpu.matmul %106, %102, %cst_54 {dimension_numbers = #tpu.dot_dimension_numbers<[1], [0], [0], [1], [0, 0, 1, 1], [], []>} : vector<8x32xbf16>, vector<32x128xbf16>, vector<8x128xf32> -> vector<8x128xf32>
    %108 = vector.broadcast %104 : vector<1x128xf32> to vector<8x128xf32>
    %109 = arith.addf %107, %108 : vector<8x128xf32>
    %cst_55 = arith.constant 0.000000e+00 : f32
    %110 = vector.broadcast %cst_55 : f32 to vector<8x128xf32>
    %111 = arith.maximumf %109, %110 : vector<8x128xf32>
    %112 = vector.extract_strided_slice %100 {offsets = [0, 0], sizes = [8, 32], strides = [1, 1]} : vector<8x128xf32> to vector<8x32xf32>
    %113 = arith.truncf %112 : vector<8x32xf32> to vector<8x32xbf16>
    %cst_56 = arith.constant dense<0.000000e+00> : vector<8x128xf32>
    %114 = tpu.matmul %113, %102, %cst_56 {dimension_numbers = #tpu.dot_dimension_numbers<[1], [0], [0], [1], [0, 0, 1, 1], [], []>} : vector<8x32xbf16>, vector<32x128xbf16>, vector<8x128xf32> -> vector<8x128xf32>
    %115 = vector.broadcast %104 : vector<1x128xf32> to vector<8x128xf32>
    %116 = arith.addf %114, %115 : vector<8x128xf32>
    %cst_57 = arith.constant 0.000000e+00 : f32
    %117 = vector.broadcast %cst_57 : f32 to vector<8x128xf32>
    %118 = arith.maximumf %116, %117 : vector<8x128xf32>
    %c6 = arith.constant 6 : index
    %c0_58 = arith.constant 0 : index
    %c0_59 = arith.constant 0 : index
    %119 = vector.load %arg2[%c6, %c0_58, %c0_59] : memref<8x32x128xbf16, #tpu.memory_space<vmem>>, vector<1x32x128xbf16>
    %120 = vector.shape_cast %119 : vector<1x32x128xbf16> to vector<32x128xbf16>
    %c6_60 = arith.constant 6 : index
    %c0_61 = arith.constant 0 : index
    %c0_62 = arith.constant 0 : index
    %121 = vector.load %arg3[%c6_60, %c0_61, %c0_62] : memref<8x1x128xf32, #tpu.memory_space<vmem>>, vector<1x1x128xf32>
    %122 = vector.shape_cast %121 : vector<1x1x128xf32> to vector<1x128xf32>
    %123 = vector.extract_strided_slice %111 {offsets = [0, 0], sizes = [8, 32], strides = [1, 1]} : vector<8x128xf32> to vector<8x32xf32>
    %124 = arith.truncf %123 : vector<8x32xf32> to vector<8x32xbf16>
    %cst_63 = arith.constant dense<0.000000e+00> : vector<8x128xf32>
    %125 = tpu.matmul %124, %120, %cst_63 {dimension_numbers = #tpu.dot_dimension_numbers<[1], [0], [0], [1], [0, 0, 1, 1], [], []>} : vector<8x32xbf16>, vector<32x128xbf16>, vector<8x128xf32> -> vector<8x128xf32>
    %126 = vector.broadcast %122 : vector<1x128xf32> to vector<8x128xf32>
    %127 = arith.addf %125, %126 : vector<8x128xf32>
    %cst_64 = arith.constant 0.000000e+00 : f32
    %128 = vector.broadcast %cst_64 : f32 to vector<8x128xf32>
    %129 = arith.maximumf %127, %128 : vector<8x128xf32>
    %130 = vector.extract_strided_slice %118 {offsets = [0, 0], sizes = [8, 32], strides = [1, 1]} : vector<8x128xf32> to vector<8x32xf32>
    %131 = arith.truncf %130 : vector<8x32xf32> to vector<8x32xbf16>
    %cst_65 = arith.constant dense<0.000000e+00> : vector<8x128xf32>
    %132 = tpu.matmul %131, %120, %cst_65 {dimension_numbers = #tpu.dot_dimension_numbers<[1], [0], [0], [1], [0, 0, 1, 1], [], []>} : vector<8x32xbf16>, vector<32x128xbf16>, vector<8x128xf32> -> vector<8x128xf32>
    %133 = vector.broadcast %122 : vector<1x128xf32> to vector<8x128xf32>
    %134 = arith.addf %132, %133 : vector<8x128xf32>
    %cst_66 = arith.constant 0.000000e+00 : f32
    %135 = vector.broadcast %cst_66 : f32 to vector<8x128xf32>
    %136 = arith.maximumf %134, %135 : vector<8x128xf32>
    %c7 = arith.constant 7 : index
    %c0_67 = arith.constant 0 : index
    %c0_68 = arith.constant 0 : index
    %137 = vector.load %arg2[%c7, %c0_67, %c0_68] : memref<8x32x128xbf16, #tpu.memory_space<vmem>>, vector<1x32x128xbf16>
    %138 = vector.shape_cast %137 : vector<1x32x128xbf16> to vector<32x128xbf16>
    %c7_69 = arith.constant 7 : index
    %c0_70 = arith.constant 0 : index
    %c0_71 = arith.constant 0 : index
    %139 = vector.load %arg3[%c7_69, %c0_70, %c0_71] : memref<8x1x128xf32, #tpu.memory_space<vmem>>, vector<1x1x128xf32>
    %140 = vector.shape_cast %139 : vector<1x1x128xf32> to vector<1x128xf32>
    %141 = vector.extract_strided_slice %129 {offsets = [0, 0], sizes = [8, 32], strides = [1, 1]} : vector<8x128xf32> to vector<8x32xf32>
    %142 = arith.truncf %141 : vector<8x32xf32> to vector<8x32xbf16>
    %cst_72 = arith.constant dense<0.000000e+00> : vector<8x128xf32>
    %143 = tpu.matmul %142, %138, %cst_72 {dimension_numbers = #tpu.dot_dimension_numbers<[1], [0], [0], [1], [0, 0, 1, 1], [], []>} : vector<8x32xbf16>, vector<32x128xbf16>, vector<8x128xf32> -> vector<8x128xf32>
    %144 = vector.broadcast %140 : vector<1x128xf32> to vector<8x128xf32>
    %145 = arith.addf %143, %144 : vector<8x128xf32>
    %146 = vector.extract_strided_slice %136 {offsets = [0, 0], sizes = [8, 32], strides = [1, 1]} : vector<8x128xf32> to vector<8x32xf32>
    %147 = arith.truncf %146 : vector<8x32xf32> to vector<8x32xbf16>
    %cst_73 = arith.constant dense<0.000000e+00> : vector<8x128xf32>
    %148 = tpu.matmul %147, %138, %cst_73 {dimension_numbers = #tpu.dot_dimension_numbers<[1], [0], [0], [1], [0, 0, 1, 1], [], []>} : vector<8x32xbf16>, vector<32x128xbf16>, vector<8x128xf32> -> vector<8x128xf32>
    %149 = vector.broadcast %140 : vector<1x128xf32> to vector<8x128xf32>
    %150 = arith.addf %148, %149 : vector<8x128xf32>
    %c0_74 = arith.constant 0 : index
    %c0_75 = arith.constant 0 : index
    %151 = vector.load %arg4[%c0_74, %c0_75] : memref<16x128xf32, #tpu.memory_space<vmem>>, vector<8x128xf32>
    tpu.vector_store %arg4[%c0_74, %c0_75], %145 {strides = array<i32>} : memref<16x128xf32, #tpu.memory_space<vmem>>, vector<8x128xf32>,
    %c8 = arith.constant 8 : index
    %c0_76 = arith.constant 0 : index
    %152 = vector.load %arg4[%c8, %c0_76] : memref<16x128xf32, #tpu.memory_space<vmem>>, vector<8x128xf32>
    tpu.vector_store %arg4[%c8, %c0_76], %150 {strides = array<i32>} : memref<16x128xf32, #tpu.memory_space<vmem>>, vector<8x128xf32>,
    return
  }
  func.func @transform_0(%arg0: i32) -> (i32, i32) {
    %c0_i32 = arith.constant 0 : i32
    %c0_i32_0 = arith.constant 0 : i32
    return %arg0, %c0_i32 : i32, i32
  }
  func.func @transform_1(%arg0: i32) -> (i32, i32, i32) {
    %c0_i32 = arith.constant 0 : i32
    %c0_i32_0 = arith.constant 0 : i32
    %c0_i32_1 = arith.constant 0 : i32
    %c0_i32_2 = arith.constant 0 : i32
    return %c0_i32, %c0_i32_0, %c0_i32_1 : i32, i32, i32
  }
  func.func @transform_2(%arg0: i32) -> (i32, i32, i32) {
    %c0_i32 = arith.constant 0 : i32
    %c0_i32_0 = arith.constant 0 : i32
    %c0_i32_1 = arith.constant 0 : i32
    %c0_i32_2 = arith.constant 0 : i32
    return %c0_i32, %c0_i32_0, %c0_i32_1 : i32, i32, i32
  }
  func.func @transform_3(%arg0: i32) -> (i32, i32) {
    %c0_i32 = arith.constant 0 : i32
    %c0_i32_0 = arith.constant 0 : i32
    return %arg0, %c0_i32 : i32, i32
  }
}

</mosaic_0001>

<bundles_post_ra>
// kernel: tpu_custom_call.1
= control target key start
LH: loop header
LB: loop body
LE: loop exit
PB: predicated region body
PF: predicated region fallthrough
CT: control target
= control target key end

     0   :  { %8 = vsyncpa [#allocation3], 0  ;;  %s1522_s0 = inlined_call_operand.hbm [shape: f32[16,32], index: 0, kind: input, shape index: {}]   ;;  %s1523_s1 = inlined_call_operand.hbm [shape: bf16[8,32,128], index: 1, kind: input, shape index: {}]   ;;  %s1524_s2 = inlined_call_operand.hbm [shape: f32[8,1,128], index: 2, kind: input, shape index: {}]   ;;  %s1525_s3 = inlined_call_operand.hbm [shape: f32[16,128], index: 3, kind: output, shape index: {}]  }
   0x1   :  { %9 = vsyncpa [#allocation6], 0 }
   0x2   :  { %10 = vsyncpa [#allocation4], 0  ;;  %s1354_s12 = smov [#allocation5]   ;;  %s1260_s16 = scalar_lea.hbm %s1523_s1, 2048 }
   0x3   :  { %s28_s13 = sshll.u32 %s1354_s12, 4  ;;  %p1261_p0 = scmp.ne.s32.totalorder %s1523_s1, %s1260_s16  ;;  %s29_s13 = int_to_ptr.vmem [resolvable:$true] %s28_s13 }
   0x4   :  { %p1264_p1 = scmp.lt.u32.totalorder %s1260_s16, %s1523_s1 }
   0x6   :  { %p1266_p2 = pnand %p1264_p1, %p1261_p0 }
   0x8   :  { %1269 = shalt.err (!%p1266_p2)
}
   0x9   :  { %s1270_s21 = scalar_lea.vmem %s29_s13, 2048  ;;  %p1275_p4 = scmp.lt.s32.totalorder %s29_s13, %s29_s13 }
   0xa   :  { %p1271_p3 = scmp.ne.s32.totalorder %s29_s13, %s1270_s21  ;;  %p1276_p5 = scmp.lt.s32.totalorder %s1270_s21, %s1270_s21 }
   0xc   :  { %p1277_p6 = por %p1276_p5, %p1275_p4 }
   0xe   :  { %p1278_p7 = pnand %p1277_p6, %p1271_p3 }
  0x10   :  { %1281 = shalt.err (!%p1278_p7)
}
  0x11   :  { %s1355_s22 = smov 64   ;;  %s1356_s23 = smov 4  }
  0x12   :  { %34 = dma.hbm_to_vmem [thread:$0]  %s1523_s1, 2048, %s29_s13, [#allocation6], %s1355_s22, %s1355_s22, %s1356_s23  }
  0x13   :  { %s1357_s26 = smov [#allocation2]   ;;  %s1282_s30 = scalar_lea.hbm %s1522_s0, 256 }
  0x14   :  { %s16_s27 = sshll.u32 %s1357_s26, 4  ;;  %p1283_p8 = scmp.ne.s32.totalorder %s1522_s0, %s1282_s30  ;;  %s17_s27 = int_to_ptr.vmem [resolvable:$true] %s16_s27 }
  0x15   :  { %p1286_p9 = scmp.lt.u32.totalorder %s1282_s30, %s1522_s0 }
  0x17   :  { %p1288_p10 = pnand %p1286_p9, %p1283_p8 }
  0x19   :  { %1291 = shalt.err (!%p1288_p10)
}
  0x1a   :  { %s1292_s8 = scalar_lea.vmem %s17_s27, 256  ;;  %p1297_p12 = scmp.lt.s32.totalorder %s17_s27, %s17_s27 }
  0x1b   :  { %p1293_p11 = scmp.ne.s32.totalorder %s17_s27, %s1292_s8  ;;  %p1298_p13 = scmp.lt.s32.totalorder %s1292_s8, %s1292_s8 }
  0x1d   :  { %p1299_p0 = por %p1298_p13, %p1297_p12 }
  0x1f   :  { %p1300_p1 = pnand %p1299_p0, %p1293_p11 }
  0x21   :  { %1303 = shalt.err (!%p1300_p1)
}
  0x22   :  { %s1358_s1 = smov 128   ;;  %s1359_s9 = smov 8  }
  0x23   :  { %22 = dma.hbm_to_vmem [thread:$0]  %s1522_s0, 256, %s17_s27, [#allocation3], %s1358_s1, %s1358_s1, %s1359_s9  }
  0x24   :  { %s1360_s12 = smov [#allocation7]   ;;  %s1304_s16 = scalar_lea.hbm %s1524_s2, 128 }
  0x25   :  { %s40_s13 = sshll.u32 %s1360_s12, 4  ;;  %p1305_p2 = scmp.ne.s32.totalorder %s1524_s2, %s1304_s16  ;;  %s41_s13 = int_to_ptr.vmem [resolvable:$true] %s40_s13 }
  0x26   :  { %p1308_p3 = scmp.lt.u32.totalorder %s1304_s16, %s1524_s2 }
  0x28   :  { %p1310_p4 = pnand %p1308_p3, %p1305_p2 }
  0x2a   :  { %1313 = shalt.err (!%p1310_p4)
}
  0x2b   :  { %s1314_s21 = scalar_lea.vmem %s41_s13, 128  ;;  %p1319_p6 = scmp.lt.s32.totalorder %s41_s13, %s41_s13 }
  0x2c   :  { %p1315_p5 = scmp.ne.s32.totalorder %s41_s13, %s1314_s21  ;;  %p1320_p7 = scmp.lt.s32.totalorder %s1314_s21, %s1314_s21 }
  0x2e   :  { %p1321_p8 = por %p1320_p7, %p1319_p6 }
  0x30   :  { %p1322_p9 = pnand %p1321_p8, %p1315_p5 }
  0x32   :  { %1325 = shalt.err (!%p1322_p9)
}
  0x33   :  { %s1361_s0 = smov 16   ;;  %s1362_s22 = smov 1  }
  0x34   :  { %46 = dma.hbm_to_vmem [thread:$0]  %s1524_s2, 128, %s41_s13, [#allocation6], %s1361_s0, %s1361_s0, %s1362_s22  }
  0x35   :  { %1348 = dma.done.wait [#allocation3], 256  }
  0x36   :  { %1349 = vsyncadd [#allocation3], 4294967040 }
  0x37   :  { %1350 = dma.done.wait [#allocation6], 2176  }
  0x38   :  { %1351 = vsyncadd [#allocation6], 4294965120  ;;  %v57_v0 = vld [vmem:[#allocation2] sm:$0xff]  ;;  %vm61_vm0 = vcmask 261120   ;;  %v58_v1 = vld [vmem:[#allocation2 + $0x8] sm:$0xff]  ;;  %v1363_v7 = vmov 0.0  }
  0x39   :  { %v59_v2 = vmul.f32 %v57_v0, %v57_v0  ;;  %v60_v3 = vmul.f32 %v58_v1, %v58_v1  ;;  %v1240_v6 = vld [vmem:[#allocation5] sm:$0xff]   ;;  %1100 = vmatprep.subr.bf16.mxu0 %v1363_v7  ;;  %1108 = vmatprep.subr.bf16.mxu1 %v1363_v7  ;;  %v1241_v8 = vld [vmem:[#allocation5 + $0x8] sm:$0xff]   ;;  %vm1364_vm1 = vmmov 0   ;;  %v1242_v21 = vld [vmem:[#allocation5 + $0x10] sm:$0xff]   ;;  %s1365_s2 = smov [#allocation8]  }
  0x3a   :  { %1101 = vmatpush3.bf16.msra.mxu0 %v1240_v6  ;;  %1109 = vmatpush3.bf16.msra.mxu1 %v1240_v6  ;;  %v1243_v22 = vld [vmem:[#allocation5 + $0x18] sm:$0xff]   ;;  %v1012_v23 = vld [vmem:[#allocation7] ss:$0 sm:$0xff]  ;;  %v1245_v39 = vld [vmem:[#allocation5 + $0x28] sm:$0xff]   ;;  %s999_s25 = sshll.u32 %s1365_s2, 4  ;;  %s1000_s25 = int_to_ptr.vmem [resolvable:$true] %s999_s25 }
  0x3b   :  { %v62_v4 = vsel %vm61_vm0, %v59_v2, 0.0  ;;  %v65_v5 = vsel %vm61_vm0, %v60_v3, 0.0  ;;  %1102 = vmatprep.subr.bf16.mxu0 %v1363_v7  ;;  %1104 = vmatprep.mubr.msk.bf16.mxu0 %vm1364_vm1, %v1363_v7  ;;  %v1244_v38 = vld [vmem:[#allocation5 + $0x20] sm:$0xff]   ;;  %v1246_v55 = vld [vmem:[#allocation5 + $0x30] sm:$0xff]   ;;  %v1247_v56 = vld [vmem:[#allocation5 + $0x38] sm:$0xff]   ;;  %s1326_s26 = scalar_lea.vmem %s1000_s25, 256  ;;  %p1331_p11 = scmp.lt.s32.totalorder %s1000_s25, %s1000_s25 }
  0x3c   :  { %63 = vadd.xlane.f32.xlu0 %v62_v4  ;;  %1110 = vmatprep.subr.bf16.mxu1 %v1363_v7  ;;  %v1017_v40 = vld [vmem:[#allocation7 + $0x1] ss:$0 sm:$0xff]  ;;  %v1022_v57 = vld [vmem:[#allocation7 + $0x2] ss:$0 sm:$0xff]  ;;  %p1327_p10 = scmp.ne.s32.totalorder %s1000_s25, %s1326_s26  ;;  %p1332_p12 = scmp.lt.s32.totalorder %s1326_s26, %s1326_s26 }
  0x3d   :  { %1112 = vmatprep.mubr.msk.bf16.mxu1 %vm1364_vm1, %v1363_v7 }
  0x3e   :  { %1103 = vmatpush3.bf16.msra.mxu0 %v1241_v8  ;;  %1111 = vmatpush3.bf16.msra.mxu1 %v1241_v8  ;;  %p1333_p13 = por %p1332_p12, %p1331_p11 }
  0x3f   :  { %1116 = vmatprep.subr.bf16.mxu0 %v1363_v7  ;;  %1124 = vmatprep.subr.bf16.mxu1 %v1363_v7 }
  0x40   :  { %66 = vadd.xlane.f32.xlu0 %v65_v5  ;;  %p1334_p0 = pnand %p1333_p13, %p1327_p10 }
  0xc9   :  { %v64_v9 = vpop.xlane.xlu0 %63 }
  0xca   :  { %v68_v10 = vmul.f32 0.03125, %v64_v9  ;;  %v1248_v9 = vld [vmem:[#allocation5 + $0x40] sm:$0xff]  }
  0xcc   :  { %v70_v11 = vadd.f32 1e-08, %v68_v10  ;;  %v1249_v10 = vld [vmem:[#allocation5 + $0x48] sm:$0xff]  }
  0xcd   :  { %v67_v12 = vpop.xlane.xlu0 %66 }
  0xce   :  { %1256 = vrsqrt.f32 %v70_v11  ;;  %v69_v13 = vmul.f32 0.03125, %v67_v12  ;;  %v1027_v11 = vld [vmem:[#allocation7 + $0x3] ss:$0 sm:$0xff] }
  0xd0   :  { %v71_v14 = vadd.f32 1e-08, %v69_v13 }
  0xd2   :  { %1258 = vrsqrt.f32 %v71_v14 }
  0xd8   :  { %v1257_v15 = vpop.eup %1256 }
  0xd9   :  { %v74_v16 = vmul.f32 %v1257_v15, %v57_v0 }
  0xdb   :  { %v81_v17 = vpack.c.bf16 %v74_v16, %v74_v16 }
  0xdc   :  { %v1259_v18 = vpop.eup %1258 }
  0xdd   :  { %1105 = vmatmul.mubr.msk.bf16.vlgmr.msra.gmra.mrb[0].mxu0 %vm61_vm0, %v81_v17  ;;  %v75_v19 = vmul.f32 %v1259_v18, %v58_v1 }
  0xde   :  { %1120 = vmatprep.mubr.msk.bf16.mxu0 %vm1364_vm1, %v1363_v7  ;;  %1117 = vmatpush3.bf16.msra.mxu0 %v1242_v21 }
  0xdf   :  { %v144_v20 = vpack.c.bf16 %v75_v19, %v75_v19  ;;  %1118 = vmatprep.subr.bf16.mxu0 %v1363_v7 }
  0xe1   :  { %1113 = vmatmul.mubr.msk.bf16.vlgmr.msra.gmra.mrb[0].mxu1 %vm61_vm0, %v144_v20 }
  0xe2   :  { %1128 = vmatprep.mubr.msk.bf16.mxu1 %vm1364_vm1, %v1363_v7  ;;  %1125 = vmatpush3.bf16.msra.mxu1 %v1242_v21 }
  0xe3   :  { %1126 = vmatprep.subr.bf16.mxu1 %v1363_v7  ;;  %1119 = vmatpush3.bf16.msra.mxu0 %v1243_v22 }
  0xe4   :  { %1132 = vmatprep.subr.bf16.mxu0 %v1363_v7 }
  0xe6   :  { %1127 = vmatpush3.bf16.msra.mxu1 %v1243_v22 }
  0xe7   :  { %1140 = vmatprep.subr.bf16.mxu1 %v1363_v7 }
 0x1b0   :  { %v137_v24 = vpop.f32.mrb[0].mxu0 }
 0x1b1   :  { %v138_v25 = vadd.f32 %v1012_v23, %v137_v24  ;;  %v1106_v26 = vpop.f32.mrb[1].mxu0 }
 0x1b2   :  { %v140_v27 = vpop.f32.mrb[2].mxu0  ;;  %v1250_v26 = vld [vmem:[#allocation5 + $0x50] sm:$0xff]  }
 0x1b3   :  { %v143_v28 = vmax.f32 %v138_v25, 0.0  ;;  %v1107_v29 = vpop.f32.mrb[3].mxu0  ;;  %v1251_v27 = vld [vmem:[#allocation5 + $0x58] sm:$0xff]  }
 0x1b4   :  { %v182_v30 = vpop.f32.mrb[0].mxu1 }
 0x1b5   :  { %v196_v31 = vpack.c.bf16 %v143_v28, %v143_v28  ;;  %v183_v32 = vadd.f32 %v1012_v23, %v182_v30  ;;  %v1114_v33 = vpop.f32.mrb[1].mxu1  ;;  %v1032_v28 = vld [vmem:[#allocation7 + $0x4] ss:$0 sm:$0xff] }
 0x1b6   :  { %v185_v34 = vpop.f32.mrb[2].mxu1 }
 0x1b7   :  { %v188_v35 = vmax.f32 %v183_v32, 0.0  ;;  %v1115_v36 = vpop.f32.mrb[3].mxu1  ;;  %1121 = vmatmul.mubr.msk.bf16.vlgmr.msra.gmra.mrb[4].mxu0 %vm61_vm0, %v196_v31 }
 0x1b8   :  { %1136 = vmatprep.mubr.msk.bf16.mxu0 %vm1364_vm1, %v1363_v7  ;;  %1133 = vmatpush3.bf16.msra.mxu0 %v1244_v38 }
 0x1b9   :  { %v259_v37 = vpack.c.bf16 %v188_v35, %v188_v35  ;;  %1134 = vmatprep.subr.bf16.mxu0 %v1363_v7 }
 0x1bb   :  { %1129 = vmatmul.mubr.msk.bf16.vlgmr.msra.gmra.mrb[4].mxu1 %vm61_vm0, %v259_v37 }
 0x1bc   :  { %1144 = vmatprep.mubr.msk.bf16.mxu1 %vm1364_vm1, %v1363_v7  ;;  %1141 = vmatpush3.bf16.msra.mxu1 %v1244_v38 }
 0x1bd   :  { %1142 = vmatprep.subr.bf16.mxu1 %v1363_v7  ;;  %1135 = vmatpush3.bf16.msra.mxu0 %v1245_v39 }
 0x1be   :  { %1148 = vmatprep.subr.bf16.mxu0 %v1363_v7 }
 0x1c0   :  { %1143 = vmatpush3.bf16.msra.mxu1 %v1245_v39 }
 0x1c1   :  { %1156 = vmatprep.subr.bf16.mxu1 %v1363_v7 }
 0x28a   :  { %v252_v41 = vpop.f32.mrb[4].mxu0 }
 0x28b   :  { %v253_v42 = vadd.f32 %v1017_v40, %v252_v41  ;;  %v1122_v43 = vpop.f32.mrb[5].mxu0 }
 0x28c   :  { %v255_v44 = vpop.f32.mrb[6].mxu0  ;;  %v1252_v43 = vld [vmem:[#allocation5 + $0x60] sm:$0xff]  }
 0x28d   :  { %v258_v45 = vmax.f32 %v253_v42, 0.0  ;;  %v1123_v46 = vpop.f32.mrb[7].mxu0  ;;  %v1253_v44 = vld [vmem:[#allocation5 + $0x68] sm:$0xff]  }
 0x28e   :  { %v297_v47 = vpop.f32.mrb[4].mxu1 }
 0x28f   :  { %v311_v48 = vpack.c.bf16 %v258_v45, %v258_v45  ;;  %v298_v49 = vadd.f32 %v1017_v40, %v297_v47  ;;  %v1130_v50 = vpop.f32.mrb[5].mxu1  ;;  %v1037_v45 = vld [vmem:[#allocation7 + $0x5] ss:$0 sm:$0xff] }
 0x290   :  { %v300_v51 = vpop.f32.mrb[6].mxu1 }
 0x291   :  { %v303_v52 = vmax.f32 %v298_v49, 0.0  ;;  %v1131_v53 = vpop.f32.mrb[7].mxu1  ;;  %1137 = vmatmul.mubr.msk.bf16.vlgmr.msra.gmra.mrb[8].mxu0 %vm61_vm0, %v311_v48 }
 0x292   :  { %1152 = vmatprep.mubr.msk.bf16.mxu0 %vm1364_vm1, %v1363_v7  ;;  %1149 = vmatpush3.bf16.msra.mxu0 %v1246_v55 }
 0x293   :  { %v374_v54 = vpack.c.bf16 %v303_v52, %v303_v52  ;;  %1150 = vmatprep.subr.bf16.mxu0 %v1363_v7 }
 0x295   :  { %1145 = vmatmul.mubr.msk.bf16.vlgmr.msra.gmra.mrb[8].mxu1 %vm61_vm0, %v374_v54 }
 0x296   :  { %1160 = vmatprep.mubr.msk.bf16.mxu1 %vm1364_vm1, %v1363_v7  ;;  %1157 = vmatpush3.bf16.msra.mxu1 %v1246_v55 }
 0x297   :  { %1158 = vmatprep.subr.bf16.mxu1 %v1363_v7  ;;  %1151 = vmatpush3.bf16.msra.mxu0 %v1247_v56 }
 0x298   :  { %1164 = vmatprep.subr.bf16.mxu0 %v1363_v7 }
 0x29a   :  { %1159 = vmatpush3.bf16.msra.mxu1 %v1247_v56 }
 0x29b   :  { %1172 = vmatprep.subr.bf16.mxu1 %v1363_v7 }
 0x364   :  { %v367_v58 = vpop.f32.mrb[8].mxu0 }
 0x365   :  { %v368_v59 = vadd.f32 %v1022_v57, %v367_v58  ;;  %v1138_v60 = vpop.f32.mrb[9].mxu0 }
 0x366   :  { %v370_v61 = vpop.f32.mrb[10].mxu0  ;;  %v1254_v60 = vld [vmem:[#allocation5 + $0x70] sm:$0xff]  }
 0x367   :  { %v373_v62 = vmax.f32 %v368_v59, 0.0  ;;  %v1139_v63 = vpop.f32.mrb[11].mxu0  ;;  %v1255_v61 = vld [vmem:[#allocation5 + $0x78] sm:$0xff]  }
 0x368   :  { %v412_v0 = vpop.f32.mrb[8].mxu1 }
 0x369   :  { %v426_v1 = vpack.c.bf16 %v373_v62, %v373_v62  ;;  %v413_v2 = vadd.f32 %v1022_v57, %v412_v0  ;;  %v1146_v3 = vpop.f32.mrb[9].mxu1  ;;  %v1042_v62 = vld [vmem:[#allocation7 + $0x6] ss:$0 sm:$0xff] }
 0x36a   :  { %v415_v4 = vpop.f32.mrb[10].mxu1 }
 0x36b   :  { %v418_v5 = vmax.f32 %v413_v2, 0.0  ;;  %v1147_v6 = vpop.f32.mrb[11].mxu1  ;;  %1153 = vmatmul.mubr.msk.bf16.vlgmr.msra.gmra.mrb[12].mxu0 %vm61_vm0, %v426_v1 }
 0x36c   :  { %1168 = vmatprep.mubr.msk.bf16.mxu0 %vm1364_vm1, %v1363_v7  ;;  %1165 = vmatpush3.bf16.msra.mxu0 %v1248_v9 }
 0x36d   :  { %v489_v8 = vpack.c.bf16 %v418_v5, %v418_v5  ;;  %1166 = vmatprep.subr.bf16.mxu0 %v1363_v7 }
 0x36f   :  { %1161 = vmatmul.mubr.msk.bf16.vlgmr.msra.gmra.mrb[12].mxu1 %vm61_vm0, %v489_v8 }
 0x370   :  { %1176 = vmatprep.mubr.msk.bf16.mxu1 %vm1364_vm1, %v1363_v7  ;;  %1173 = vmatpush3.bf16.msra.mxu1 %v1248_v9 }
 0x371   :  { %1174 = vmatprep.subr.bf16.mxu1 %v1363_v7  ;;  %1167 = vmatpush3.bf16.msra.mxu0 %v1249_v10 }
 0x372   :  { %1180 = vmatprep.subr.bf16.mxu0 %v1363_v7 }
 0x374   :  { %1175 = vmatpush3.bf16.msra.mxu1 %v1249_v10 }
 0x375   :  { %1188 = vmatprep.subr.bf16.mxu1 %v1363_v7 }
 0x43e   :  { %v482_v12 = vpop.f32.mrb[12].mxu0 }
 0x43f   :  { %v483_v13 = vadd.f32 %v1027_v11, %v482_v12  ;;  %v1154_v14 = vpop.f32.mrb[13].mxu0 }
 0x440   :  { %v485_v15 = vpop.f32.mrb[14].mxu0 }
 0x441   :  { %v488_v16 = vmax.f32 %v483_v13, 0.0  ;;  %v1155_v17 = vpop.f32.mrb[15].mxu0  ;;  %v1047_v13 = vld [vmem:[#allocation7 + $0x7] ss:$0 sm:$0xff] }
 0x442   :  { %v527_v18 = vpop.f32.mrb[12].mxu1 }
 0x443   :  { %v541_v19 = vpack.c.bf16 %v488_v16, %v488_v16  ;;  %v528_v20 = vadd.f32 %v1027_v11, %v527_v18  ;;  %v1162_v21 = vpop.f32.mrb[13].mxu1 }
 0x444   :  { %v530_v22 = vpop.f32.mrb[14].mxu1 }
 0x445   :  { %v533_v23 = vmax.f32 %v528_v20, 0.0  ;;  %v1163_v24 = vpop.f32.mrb[15].mxu1  ;;  %1169 = vmatmul.mubr.msk.bf16.vlgmr.msra.gmra.mrb[16].mxu0 %vm61_vm0, %v541_v19 }
 0x446   :  { %1184 = vmatprep.mubr.msk.bf16.mxu0 %vm1364_vm1, %v1363_v7  ;;  %1181 = vmatpush3.bf16.msra.mxu0 %v1250_v26 }
 0x447   :  { %v604_v25 = vpack.c.bf16 %v533_v23, %v533_v23  ;;  %1182 = vmatprep.subr.bf16.mxu0 %v1363_v7 }
 0x449   :  { %1177 = vmatmul.mubr.msk.bf16.vlgmr.msra.gmra.mrb[16].mxu1 %vm61_vm0, %v604_v25 }
 0x44a   :  { %1192 = vmatprep.mubr.msk.bf16.mxu1 %vm1364_vm1, %v1363_v7  ;;  %1189 = vmatpush3.bf16.msra.mxu1 %v1250_v26 }
 0x44b   :  { %1190 = vmatprep.subr.bf16.mxu1 %v1363_v7  ;;  %1183 = vmatpush3.bf16.msra.mxu0 %v1251_v27 }
 0x44c   :  { %1196 = vmatprep.subr.bf16.mxu0 %v1363_v7 }
 0x44e   :  { %1191 = vmatpush3.bf16.msra.mxu1 %v1251_v27 }
 0x44f   :  { %1204 = vmatprep.subr.bf16.mxu1 %v1363_v7 }
 0x518   :  { %v597_v29 = vpop.f32.mrb[16].mxu0 }
 0x519   :  { %v598_v30 = vadd.f32 %v1032_v28, %v597_v29  ;;  %v1170_v31 = vpop.f32.mrb[17].mxu0 }
 0x51a   :  { %v600_v32 = vpop.f32.mrb[18].mxu0 }
 0x51b   :  { %v603_v33 = vmax.f32 %v598_v30, 0.0  ;;  %v1171_v34 = vpop.f32.mrb[19].mxu0 }
 0x51c   :  { %v642_v35 = vpop.f32.mrb[16].mxu1 }
 0x51d   :  { %v656_v36 = vpack.c.bf16 %v603_v33, %v603_v33  ;;  %v643_v37 = vadd.f32 %v1032_v28, %v642_v35  ;;  %v1178_v38 = vpop.f32.mrb[17].mxu1 }
 0x51e   :  { %v645_v39 = vpop.f32.mrb[18].mxu1 }
 0x51f   :  { %v648_v40 = vmax.f32 %v643_v37, 0.0  ;;  %v1179_v41 = vpop.f32.mrb[19].mxu1  ;;  %1185 = vmatmul.mubr.msk.bf16.vlgmr.msra.gmra.mrb[20].mxu0 %vm61_vm0, %v656_v36 }
 0x520   :  { %1200 = vmatprep.mubr.msk.bf16.mxu0 %vm1364_vm1, %v1363_v7  ;;  %1197 = vmatpush3.bf16.msra.mxu0 %v1252_v43 }
 0x521   :  { %v719_v42 = vpack.c.bf16 %v648_v40, %v648_v40  ;;  %1198 = vmatprep.subr.bf16.mxu0 %v1363_v7 }
 0x523   :  { %1193 = vmatmul.mubr.msk.bf16.vlgmr.msra.gmra.mrb[20].mxu1 %vm61_vm0, %v719_v42 }
 0x524   :  { %1208 = vmatprep.mubr.msk.bf16.mxu1 %vm1364_vm1, %v1363_v7  ;;  %1205 = vmatpush3.bf16.msra.mxu1 %v1252_v43 }
 0x525   :  { %1206 = vmatprep.subr.bf16.mxu1 %v1363_v7  ;;  %1199 = vmatpush3.bf16.msra.mxu0 %v1253_v44 }
 0x526   :  { %1212 = vmatprep.subr.bf16.mxu0 %v1363_v7 }
 0x528   :  { %1207 = vmatpush3.bf16.msra.mxu1 %v1253_v44 }
 0x529   :  { %1220 = vmatprep.subr.bf16.mxu1 %v1363_v7 }
 0x5f2   :  { %v712_v46 = vpop.f32.mrb[20].mxu0 }
 0x5f3   :  { %v713_v47 = vadd.f32 %v1037_v45, %v712_v46  ;;  %v1186_v48 = vpop.f32.mrb[21].mxu0 }
 0x5f4   :  { %v715_v49 = vpop.f32.mrb[22].mxu0 }
 0x5f5   :  { %v718_v50 = vmax.f32 %v713_v47, 0.0  ;;  %v1187_v51 = vpop.f32.mrb[23].mxu0 }
 0x5f6   :  { %v757_v52 = vpop.f32.mrb[20].mxu1 }
 0x5f7   :  { %v771_v53 = vpack.c.bf16 %v718_v50, %v718_v50  ;;  %v758_v54 = vadd.f32 %v1037_v45, %v757_v52  ;;  %v1194_v55 = vpop.f32.mrb[21].mxu1 }
 0x5f8   :  { %v760_v56 = vpop.f32.mrb[22].mxu1 }
 0x5f9   :  { %v763_v57 = vmax.f32 %v758_v54, 0.0  ;;  %v1195_v58 = vpop.f32.mrb[23].mxu1  ;;  %1201 = vmatmul.mubr.msk.bf16.vlgmr.msra.gmra.mrb[24].mxu0 %vm61_vm0, %v771_v53 }
 0x5fa   :  { %1216 = vmatprep.mubr.msk.bf16.mxu0 %vm1364_vm1, %v1363_v7  ;;  %1213 = vmatpush3.bf16.msra.mxu0 %v1254_v60 }
 0x5fb   :  { %v834_v59 = vpack.c.bf16 %v763_v57, %v763_v57  ;;  %1214 = vmatprep.subr.bf16.mxu0 %v1363_v7 }
 0x5fd   :  { %1209 = vmatmul.mubr.msk.bf16.vlgmr.msra.gmra.mrb[24].mxu1 %vm61_vm0, %v834_v59 }
 0x5fe   :  { %1224 = vmatprep.mubr.msk.bf16.mxu1 %vm1364_vm1, %v1363_v7  ;;  %1221 = vmatpush3.bf16.msra.mxu1 %v1254_v60 }
 0x5ff   :  { %1222 = vmatprep.subr.bf16.mxu1 %v1363_v7  ;;  %1215 = vmatpush3.bf16.msra.mxu0 %v1255_v61 }
 0x602   :  { %1223 = vmatpush3.bf16.msra.mxu1 %v1255_v61 }
 0x6cc   :  { %v827_v63 = vpop.f32.mrb[24].mxu0 }
 0x6cd   :  { %v828_v0 = vadd.f32 %v1042_v62, %v827_v63  ;;  %v1202_v1 = vpop.f32.mrb[25].mxu0 }
 0x6ce   :  { %v830_v2 = vpop.f32.mrb[26].mxu0 }
 0x6cf   :  { %v833_v3 = vmax.f32 %v828_v0, 0.0  ;;  %v1203_v4 = vpop.f32.mrb[27].mxu0 }
 0x6d0   :  { %v872_v5 = vpop.f32.mrb[24].mxu1 }
 0x6d1   :  { %v886_v6 = vpack.c.bf16 %v833_v3, %v833_v3  ;;  %v873_v8 = vadd.f32 %v1042_v62, %v872_v5  ;;  %v1210_v9 = vpop.f32.mrb[25].mxu1 }
 0x6d2   :  { %v875_v10 = vpop.f32.mrb[26].mxu1 }
 0x6d3   :  { %v878_v11 = vmax.f32 %v873_v8, 0.0  ;;  %v1211_v12 = vpop.f32.mrb[27].mxu1  ;;  %1217 = vmatmul.mubr.msk.bf16.vlgmr.msra.gmra.mrb[28].mxu0 %vm61_vm0, %v886_v6 }
 0x6d5   :  { %v948_v7 = vpack.c.bf16 %v878_v11, %v878_v11 }
 0x6d7   :  { %1225 = vmatmul.mubr.msk.bf16.vlgmr.msra.gmra.mrb[28].mxu1 %vm61_vm0, %v948_v7 }
 0x7a6   :  { %v942_v14 = vpop.f32.mrb[28].mxu0 }
 0x7a7   :  { %v943_v15 = vadd.f32 %v1047_v13, %v942_v14  ;;  %v1218_v16 = vpop.f32.mrb[29].mxu0 }
 0x7a8   :  { %v945_v17 = vpop.f32.mrb[30].mxu0 }
 0x7a9   :  { %992 = vst [vmem:[#allocation8] sm:$0xff] %v943_v15  ;;  %v1219_v18 = vpop.f32.mrb[31].mxu0 }
 0x7aa   :  { %v986_v19 = vpop.f32.mrb[28].mxu1 }
 0x7ab   :  { %v987_v20 = vadd.f32 %v1047_v13, %v986_v19  ;;  %v1226_v21 = vpop.f32.mrb[29].mxu1 }
 0x7ac   :  { %v989_v22 = vpop.f32.mrb[30].mxu1 }
 0x7ad   :  { %993 = vst [vmem:[#allocation8 + $0x8] sm:$0xff] %v987_v20  ;;  %v1227_v23 = vpop.f32.mrb[31].mxu1 }
 0x7ae   :  { %1337 = shalt.err (!%p1334_p0)
}
 0x7af   :  { %s1338_s29 = scalar_lea.hbm %s1525_s3, 256 }
 0x7b0   :  { %p1339_p1 = scmp.ne.s32.totalorder %s1525_s3, %s1338_s29  ;;  %p1342_p2 = scmp.lt.u32.totalorder %s1338_s29, %s1525_s3 }
 0x7b2   :  { %p1344_p3 = pnand %p1342_p2, %p1339_p1 }
 0x7b4   :  { %1347 = shalt.err (!%p1344_p3)
}
 0x7b5   :  { %1005 = dma.vmem_to_hbm [thread:$0]  %s1000_s25, 256, %s1525_s3, [#allocation4], %s1358_s1, %s1358_s1, %s1359_s9  }
 0x7b6   :  { %1352 = dma.done.wait [#allocation4], 256  }
 0x7b7   :  { %1353 = vsyncadd [#allocation4], 4294967040 }
 0x7b8   :  { %1009 = vsyncpa [#allocation3], 1 }
 0x7b9   :  { %1010 = vsyncpa [#allocation6], 1 }
 0x7ba   :  { %1011 = vsyncpa [#allocation4], 1 }

</bundles_post_ra>
